<compile_context>
chip_gen: v7x
topology: tpu7x:2x2x1
jax: 0.10.0
libtpu: 0.0.40
codegen_flags: <defaults>
</compile_context>

<pallas_src>
import jax
import jax.numpy as jnp
from jax.experimental import pallas as pl
from jax.experimental.pallas import tpu as pltpu


def _round_up(x: int, m: int) -> int:
    return (x + m - 1) // m * m


# ---------------------------------------------------------------------------
# Kernel: hidden computed once (pl.when), then per-N-tile block-sparse L2.
# ---------------------------------------------------------------------------
def _make_decoder_kernel(h_dim: int, n_heads: int = 3):
    def kernel(head_ids_ref,                     # SMEM scalar-prefetch (n_tiles,)
               z_ref, wfc_ref, bfc_ref,          # resident (fetched once)
               w1_ref, b1_ref,                   # resident (3,h,h) / (3,1,h)
               w2_ref, b2_ref,                   # streamed (h,TILE_N)/(1,TILE_N)
               o_ref,                            # streamed out tile (B_pad,TILE_N)
               hid_ref):                         # VMEM scratch (3,B_pad,h) bf16
        j = pl.program_id(0)

        # --- fc(+ReLU) and the three per-head L1(+ReLU): computed once. -----
        @pl.when(j == 0)
        def _():
            x = jnp.dot(z_ref[...], wfc_ref[...],
                        preferred_element_type=jnp.float32)
            x = jnp.maximum(x + bfc_ref[...], 0.0)            # (B_pad, 3h) f32
            for head in range(n_heads):                        # static unroll
                xh = x[:, head * h_dim:(head + 1) * h_dim]     # (B_pad, h)
                hh = jnp.dot(xh, w1_ref[head],
                             preferred_element_type=jnp.float32)
                hh = jnp.maximum(hh + b1_ref[head], 0.0)
                hid_ref[head] = hh.astype(hid_ref.dtype)       # bf16

        # --- block-sparse L2: only the owning head's hidden slice. ----------
        head = head_ids_ref[j]                                 # scalar from SMEM
        h_act = hid_ref[head]                                  # (B_pad, h) bf16
        y = jnp.dot(h_act, w2_ref[...],
                    preferred_element_type=jnp.float32)        # (B_pad, TILE_N)
        o_ref[...] = (y + b2_ref[...]).astype(o_ref.dtype)     # bf16 writeback

    return kernel


def fused_decoder_call(z_pad, p, head_ids, *, tile_n: int, h_dim: int):
    b_pad, latent = z_pad.shape
    n_total = p["w2"].shape[1]
    n_tiles = n_total // tile_n

    grid_spec = pltpu.PrefetchScalarGridSpec(
        num_scalar_prefetch=1,
        grid=(n_tiles,),
        in_specs=[
            # Resident operands (constant block index -> DMA'd once).
            pl.BlockSpec((b_pad, latent), lambda j, hd: (0, 0)),
            pl.BlockSpec(p["wfc"].shape, lambda j, hd: (0, 0)),
            pl.BlockSpec(p["bfc"].shape, lambda j, hd: (0, 0)),
            pl.BlockSpec(p["w1"].shape, lambda j, hd: (0, 0, 0)),
            pl.BlockSpec(p["b1"].shape, lambda j, hd: (0, 0, 0)),
            # Streamed per-tile operands.
            pl.BlockSpec((h_dim, tile_n), lambda j, hd: (0, j)),
            pl.BlockSpec((1, tile_n), lambda j, hd: (0, j)),
        ],
        out_specs=pl.BlockSpec((b_pad, tile_n), lambda j, hd: (0, j)),
        scratch_shapes=[pltpu.VMEM((3, b_pad, h_dim), jnp.bfloat16)],
    )
    return pl.pallas_call(
        _make_decoder_kernel(h_dim),
        out_shape=jax.ShapeDtypeStruct((b_pad, n_total), jnp.bfloat16),
        grid_spec=grid_spec,
        compiler_params=pltpu.CompilerParams(
            dimension_semantics=("arbitrary",),   # hidden reused across N-tiles
            vmem_limit_bytes=32 * 1024 * 1024,
        ),
    )(head_ids, z_pad, p["wfc"], p["bfc"], p["w1"], p["b1"], p["w2"], p["b2"])


# ---------------------------------------------------------------------------
# Parameter construction (all packing / casting hoisted out of the hot path).
# ---------------------------------------------------------------------------
def init_params(key, cfg, tile_n: int):
    h, latent, eo = cfg["h_dim"], cfg["latent_dim"], cfg["eo_dim"]
    assert eo == 3 * h, "decoder split assumes encoder_out_dim == 3 * h_dim"
    glyph_c, (gh, gw) = cfg["glyph_classes"], cfg["glyph_shape"]
    crop = cfg["crop_dim"]

    head_n = [glyph_c * gh * gw, glyph_c * crop * crop, cfg["blstats_size"]]
    head_n_pad = [_round_up(n, tile_n) for n in head_n]   # per-head tile padding

    def dense(k, fi, fo):
        k1, k2 = jax.random.split(k)
        w = jax.random.normal(k1, (fi, fo), jnp.float32) * 0.02
        b = jax.random.normal(k2, (fo,), jnp.float32) * 0.02
        return w, b

    ks = jax.random.split(key, 7)
    wfc, bfc = dense(ks[0], latent, eo)                   # fc: Linear + ReLU

    heads_raw, w1_stk, b1_stk, w2_slabs, b2_slabs = [], [], [], [], []
    for i in range(3):                                    # spatial, ego, blstats
        w1_i, b1_i = dense(ks[1 + 2 * i], h, h)
        w2_i, b2_i = dense(ks[2 + 2 * i], h, head_n[i])
        heads_raw.append((w1_i, b1_i, w2_i, b2_i))
        w1_stk.append(w1_i)
        b1_stk.append(b1_i.reshape(1, h))
        pad = head_n_pad[i] - head_n[i]
        w2_slabs.append(jnp.pad(w2_i, ((0, 0), (0, pad))))
        b2_slabs.append(jnp.pad(b2_i, (0, pad)))

    fused = {
        "wfc": wfc,                                            # f32 (tiny stage)
        "bfc": bfc.reshape(1, eo),                             # f32
        "w1": jnp.stack(w1_stk),                               # (3, h, h) f32
        "b1": jnp.stack(b1_stk),                               # (3, 1, h) f32
        "w2": jnp.concatenate(w2_slabs, 1).astype(jnp.bfloat16),  # (h, N) bf16
        "b2": jnp.concatenate(b2_slabs).reshape(1, -1),        # (1, N) f32
    }
    head_ids = jnp.concatenate(
        [jnp.full((head_n_pad[i] // tile_n,), i, jnp.int32) for i in range(3)])
    meta = {
        "head_n": head_n,
        "head_off": [0, head_n_pad[0], head_n_pad[0] + head_n_pad[1]],
        "head_ids": head_ids,
        "tile_n": tile_n,
    }
    raw = {"fc": (wfc, bfc), "heads": heads_raw}
    return fused, raw, meta


# ---------------------------------------------------------------------------
# NetHackDecoder.forward equivalent (single Pallas launch).
# ---------------------------------------------------------------------------
def nethack_decoder_forward(fused, meta, z, cfg):
    B = z.shape[0]
    glyph_c, (gh, gw) = cfg["glyph_classes"], cfg["glyph_shape"]
    crop = cfg["crop_dim"]

    b_pad = _round_up(B, 16)                      # full bf16 sublane packing
    z_pad = jnp.zeros((b_pad, z.shape[1]), jnp.float32).at[:B].set(
        z.astype(jnp.float32))

    out = fused_decoder_call(z_pad, fused, meta["head_ids"],
                             tile_n=meta["tile_n"], h_dim=cfg["h_dim"])

    (n_sp, n_ego, n_bls) = meta["head_n"]
    (o_sp, o_ego, o_bls) = meta["head_off"]
    return {
        "glyphs": out[:B, o_sp:o_sp + n_sp].astype(jnp.float32).reshape(
            B, glyph_c, gh, gw),
        "egocentric_view": out[:B, o_ego:o_ego + n_ego].astype(
            jnp.float32).reshape(B, glyph_c, crop, crop),
        "blstats": out[:B, o_bls:o_bls + n_bls].astype(jnp.float32),
    }


# ---------------------------------------------------------------------------
# Pure-JAX reference (same numerics: f32 fc/L1, bf16 L2 operands, f32 accum,
# bf16 final rounding).
# ---------------------------------------------------------------------------
def reference_forward(raw, z, cfg):
    h = cfg["h_dim"]
    glyph_c, (gh, gw) = cfg["glyph_classes"], cfg["glyph_shape"]
    crop = cfg["crop_dim"]
    B = z.shape[0]

    wfc, bfc = raw["fc"]
    x = jnp.maximum(jnp.dot(z, wfc, preferred_element_type=jnp.float32) + bfc,
                    0.0)
    outs = []
    for i, (w1, b1, w2, b2) in enumerate(raw["heads"]):
        xh = x[:, i * h:(i + 1) * h]
        hh = jnp.maximum(
            jnp.dot(xh, w1, preferred_element_type=jnp.float32) + b1, 0.0)
        y = jnp.dot(hh.astype(jnp.bfloat16), w2.astype(jnp.bfloat16),
                    preferred_element_type=jnp.float32) + b2
        outs.append(y.astype(jnp.bfloat16).astype(jnp.float32))
    glyphs, ego, bls = outs
    return {"glyphs": glyphs.reshape(B, glyph_c, gh, gw),
            "egocentric_view": ego.reshape(B, glyph_c, crop, crop),
            "blstats": bls}


# ---------------------------------------------------------------------------
# Main
# ---------------------------------------------------------------------------
if __name__ == "__main__":
    # Small deterministic config consistent with the module:
    #   encoder_out_dim == 3 * h_dim (chunks: spatial=h, egocentric=h, blstats=h)
    cfg = {
        "latent_dim": 32,
        "h_dim": 64,
        "eo_dim": 3 * 64,
        "glyph_classes": 16,     # stand-in for int(high.mean() + 1)
        "glyph_shape": (8, 8),   # small stand-in for the (21, 79) glyph map
        "crop_dim": 9,
        "blstats_size": 8,
    }
    TILE_N = 256                 # multiple of 128; use 2048-8192 at real scale

    key = jax.random.PRNGKey(0)
    pkey, zkey = jax.random.split(key)
    fused, raw, meta = init_params(pkey, cfg, TILE_N)

    B = 2
    z = jax.random.normal(zkey, (B, cfg["latent_dim"]), jnp.float32)

    out = nethack_decoder_forward(fused, meta, z, cfg)
    out = jax.tree_util.tree_map(jax.block_until_ready, out)

    # Shape checks (mirrors the PyTorch output dict).
    assert out["glyphs"].shape == (B, cfg["glyph_classes"], *cfg["glyph_shape"])
    assert out["egocentric_view"].shape == (B, cfg["glyph_classes"],
                                            cfg["crop_dim"], cfg["crop_dim"])
    assert out["blstats"].shape == (B, cfg["blstats_size"])

    # Numerical check against the un-fused per-head reference.
    ref = reference_forward(raw, z, cfg)
    for k in out:
        assert jnp.allclose(out[k], ref[k], rtol=2e-2, atol=2e-3), k

    print("KERNEL_OK")
</pallas_src>

<mosaic_0001>
module attributes {stable_mosaic.version = 11 : i64} {
  func.func @kernel(%arg0: i32, %arg1: memref<11xi32, #tpu.memory_space<smem>>, %arg2: memref<16x32xf32, #tpu.memory_space<vmem>>, %arg3: memref<32x192xf32, #tpu.memory_space<vmem>>, %arg4: memref<1x192xf32, #tpu.memory_space<vmem>>, %arg5: memref<3x64x64xf32, #tpu.memory_space<vmem>>, %arg6: memref<3x1x64xf32, #tpu.memory_space<vmem>>, %arg7: memref<64x256xbf16, #tpu.memory_space<vmem>>, %arg8: memref<1x256xf32, #tpu.memory_space<vmem>>, %arg9: memref<16x256xbf16, #tpu.memory_space<vmem>>, %arg10: memref<3x16x64xbf16, #tpu.memory_space<vmem>>) attributes {dimension_semantics = [#tpu.dimension_semantics<arbitrary>], iteration_bounds = array<i64: 11>, scalar_prefetch = 1 : i64, scratch_operands = 1 : i64, tpu.core_type = #tpu.core_type<tc>, window_params = [{pipeline_mode = #tpu.pipeline_mode<synchronous>, transform_indices = @transform_0, window_bounds = array<i64: 16, 32>}, {pipeline_mode = #tpu.pipeline_mode<synchronous>, transform_indices = @transform_1, window_bounds = array<i64: 32, 192>}, {pipeline_mode = #tpu.pipeline_mode<synchronous>, transform_indices = @transform_2, window_bounds = array<i64: 1, 192>}, {pipeline_mode = #tpu.pipeline_mode<synchronous>, transform_indices = @transform_3, window_bounds = array<i64: 3, 64, 64>}, {pipeline_mode = #tpu.pipeline_mode<synchronous>, transform_indices = @transform_4, window_bounds = array<i64: 3, 1, 64>}, {transform_indices = @transform_5, window_bounds = array<i64: 64, 256>}, {transform_indices = @transform_6, window_bounds = array<i64: 1, 256>}, {transform_indices = @transform_7, window_bounds = array<i64: 16, 256>}]} {
    %c0_i32 = arith.constant 0 : i32
    %0 = arith.cmpi eq, %arg0, %c0_i32 : i32
    %1 = arith.extui %0 : i1 to i32
    %c0_i32_0 = arith.constant 0 : i32
    %2 = arith.cmpi ne, %1, %c0_i32_0 : i32
    scf.if %2 {
      %c0_8 = arith.constant 0 : index
      %c0_9 = arith.constant 0 : index
      %15 = vector.load %arg2[%c0_8, %c0_9] : memref<16x32xf32, #tpu.memory_space<vmem>>, vector<16x32xf32>
      %c0_10 = arith.constant 0 : index
      %c0_11 = arith.constant 0 : index
      %16 = vector.load %arg3[%c0_10, %c0_11] : memref<32x192xf32, #tpu.memory_space<vmem>>, vector<32x192xf32>
      %cst_12 = arith.constant dense<0.000000e+00> : vector<16x192xf32>
      %17 = tpu.matmul %15, %16, %cst_12 {dimension_numbers = #tpu.dot_dimension_numbers<[1], [0], [0], [1], [0, 0, 1, 1], [], []>} : vector<16x32xf32>, vector<32x192xf32>, vector<16x192xf32> -> vector<16x192xf32>
      %c0_13 = arith.constant 0 : index
      %c0_14 = arith.constant 0 : index
      %18 = vector.load %arg4[%c0_13, %c0_14] : memref<1x192xf32, #tpu.memory_space<vmem>>, vector<1x192xf32>
      %19 = vector.broadcast %18 : vector<1x192xf32> to vector<16x192xf32>
      %20 = arith.addf %17, %19 : vector<16x192xf32>
      %cst_15 = arith.constant 0.000000e+00 : f32
      %21 = vector.broadcast %cst_15 : f32 to vector<16x192xf32>
      %22 = arith.maximumf %20, %21 : vector<16x192xf32>
      %23 = vector.extract_strided_slice %22 {offsets = [0, 0], sizes = [16, 64], strides = [1, 1]} : vector<16x192xf32> to vector<16x64xf32>
      %c0_16 = arith.constant 0 : index
      %c0_17 = arith.constant 0 : index
      %c0_18 = arith.constant 0 : index
      %24 = vector.load %arg5[%c0_16, %c0_17, %c0_18] : memref<3x64x64xf32, #tpu.memory_space<vmem>>, vector<1x64x64xf32>
      %25 = vector.shape_cast %24 : vector<1x64x64xf32> to vector<64x64xf32>
      %cst_19 = arith.constant dense<0.000000e+00> : vector<16x64xf32>
      %26 = tpu.matmul %23, %25, %cst_19 {dimension_numbers = #tpu.dot_dimension_numbers<[1], [0], [0], [1], [0, 0, 1, 1], [], []>} : vector<16x64xf32>, vector<64x64xf32>, vector<16x64xf32> -> vector<16x64xf32>
      %c0_20 = arith.constant 0 : index
      %c0_21 = arith.constant 0 : index
      %c0_22 = arith.constant 0 : index
      %27 = vector.load %arg6[%c0_20, %c0_21, %c0_22] : memref<3x1x64xf32, #tpu.memory_space<vmem>>, vector<1x1x64xf32>
      %28 = vector.shape_cast %27 : vector<1x1x64xf32> to vector<1x64xf32>
      %29 = vector.broadcast %28 : vector<1x64xf32> to vector<16x64xf32>
      %30 = arith.addf %26, %29 : vector<16x64xf32>
      %cst_23 = arith.constant 0.000000e+00 : f32
      %31 = vector.broadcast %cst_23 : f32 to vector<16x64xf32>
      %32 = arith.maximumf %30, %31 : vector<16x64xf32>
      %33 = arith.truncf %32 : vector<16x64xf32> to vector<16x64xbf16>
      %c0_24 = arith.constant 0 : index
      %c0_25 = arith.constant 0 : index
      %c0_26 = arith.constant 0 : index
      %34 = vector.load %arg10[%c0_24, %c0_25, %c0_26] : memref<3x16x64xbf16, #tpu.memory_space<vmem>>, vector<1x16x64xbf16>
      %35 = vector.shape_cast %34 : vector<1x16x64xbf16> to vector<16x64xbf16>
      %36 = vector.shape_cast %33 : vector<16x64xbf16> to vector<1x16x64xbf16>
      tpu.vector_store %arg10[%c0_24, %c0_25, %c0_26], %36 {strides = array<i32>} : memref<3x16x64xbf16, #tpu.memory_space<vmem>>, vector<1x16x64xbf16>,
      %37 = vector.extract_strided_slice %22 {offsets = [0, 64], sizes = [16, 64], strides = [1, 1]} : vector<16x192xf32> to vector<16x64xf32>
      %c1 = arith.constant 1 : index
      %c0_27 = arith.constant 0 : index
      %c0_28 = arith.constant 0 : index
      %38 = vector.load %arg5[%c1, %c0_27, %c0_28] : memref<3x64x64xf32, #tpu.memory_space<vmem>>, vector<1x64x64xf32>
      %39 = vector.shape_cast %38 : vector<1x64x64xf32> to vector<64x64xf32>
      %cst_29 = arith.constant dense<0.000000e+00> : vector<16x64xf32>
      %40 = tpu.matmul %37, %39, %cst_29 {dimension_numbers = #tpu.dot_dimension_numbers<[1], [0], [0], [1], [0, 0, 1, 1], [], []>} : vector<16x64xf32>, vector<64x64xf32>, vector<16x64xf32> -> vector<16x64xf32>
      %c1_30 = arith.constant 1 : index
      %c0_31 = arith.constant 0 : index
      %c0_32 = arith.constant 0 : index
      %41 = vector.load %arg6[%c1_30, %c0_31, %c0_32] : memref<3x1x64xf32, #tpu.memory_space<vmem>>, vector<1x1x64xf32>
      %42 = vector.shape_cast %41 : vector<1x1x64xf32> to vector<1x64xf32>
      %43 = vector.broadcast %42 : vector<1x64xf32> to vector<16x64xf32>
      %44 = arith.addf %40, %43 : vector<16x64xf32>
      %cst_33 = arith.constant 0.000000e+00 : f32
      %45 = vector.broadcast %cst_33 : f32 to vector<16x64xf32>
      %46 = arith.maximumf %44, %45 : vector<16x64xf32>
      %47 = arith.truncf %46 : vector<16x64xf32> to vector<16x64xbf16>
      %c1_34 = arith.constant 1 : index
      %c0_35 = arith.constant 0 : index
      %c0_36 = arith.constant 0 : index
      %48 = vector.load %arg10[%c1_34, %c0_35, %c0_36] : memref<3x16x64xbf16, #tpu.memory_space<vmem>>, vector<1x16x64xbf16>
      %49 = vector.shape_cast %48 : vector<1x16x64xbf16> to vector<16x64xbf16>
      %50 = vector.shape_cast %47 : vector<16x64xbf16> to vector<1x16x64xbf16>
      tpu.vector_store %arg10[%c1_34, %c0_35, %c0_36], %50 {strides = array<i32>} : memref<3x16x64xbf16, #tpu.memory_space<vmem>>, vector<1x16x64xbf16>,
      %51 = vector.extract_strided_slice %22 {offsets = [0, 128], sizes = [16, 64], strides = [1, 1]} : vector<16x192xf32> to vector<16x64xf32>
      %c2 = arith.constant 2 : index
      %c0_37 = arith.constant 0 : index
      %c0_38 = arith.constant 0 : index
      %52 = vector.load %arg5[%c2, %c0_37, %c0_38] : memref<3x64x64xf32, #tpu.memory_space<vmem>>, vector<1x64x64xf32>
      %53 = vector.shape_cast %52 : vector<1x64x64xf32> to vector<64x64xf32>
      %cst_39 = arith.constant dense<0.000000e+00> : vector<16x64xf32>
      %54 = tpu.matmul %51, %53, %cst_39 {dimension_numbers = #tpu.dot_dimension_numbers<[1], [0], [0], [1], [0, 0, 1, 1], [], []>} : vector<16x64xf32>, vector<64x64xf32>, vector<16x64xf32> -> vector<16x64xf32>
      %c2_40 = arith.constant 2 : index
      %c0_41 = arith.constant 0 : index
      %c0_42 = arith.constant 0 : index
      %55 = vector.load %arg6[%c2_40, %c0_41, %c0_42] : memref<3x1x64xf32, #tpu.memory_space<vmem>>, vector<1x1x64xf32>
      %56 = vector.shape_cast %55 : vector<1x1x64xf32> to vector<1x64xf32>
      %57 = vector.broadcast %56 : vector<1x64xf32> to vector<16x64xf32>
      %58 = arith.addf %54, %57 : vector<16x64xf32>
      %cst_43 = arith.constant 0.000000e+00 : f32
      %59 = vector.broadcast %cst_43 : f32 to vector<16x64xf32>
      %60 = arith.maximumf %58, %59 : vector<16x64xf32>
      %61 = arith.truncf %60 : vector<16x64xf32> to vector<16x64xbf16>
      %c2_44 = arith.constant 2 : index
      %c0_45 = arith.constant 0 : index
      %c0_46 = arith.constant 0 : index
      %62 = vector.load %arg10[%c2_44, %c0_45, %c0_46] : memref<3x16x64xbf16, #tpu.memory_space<vmem>>, vector<1x16x64xbf16>
      %63 = vector.shape_cast %62 : vector<1x16x64xbf16> to vector<16x64xbf16>
      %64 = vector.shape_cast %61 : vector<16x64xbf16> to vector<1x16x64xbf16>
      tpu.vector_store %arg10[%c2_44, %c0_45, %c0_46], %64 {strides = array<i32>} : memref<3x16x64xbf16, #tpu.memory_space<vmem>>, vector<1x16x64xbf16>,
    } else {
    }
    %3 = arith.index_cast %arg0 : i32 to index
    %4 = memref.load %arg1[%3] : memref<11xi32, #tpu.memory_space<smem>>
    %5 = arith.index_cast %4 : i32 to index
    %c0 = arith.constant 0 : index
    %c0_1 = arith.constant 0 : index
    %6 = vector.load %arg10[%5, %c0, %c0_1] : memref<3x16x64xbf16, #tpu.memory_space<vmem>>, vector<1x16x64xbf16>
    %7 = vector.shape_cast %6 : vector<1x16x64xbf16> to vector<16x64xbf16>
    %c0_2 = arith.constant 0 : index
    %c0_3 = arith.constant 0 : index
    %8 = vector.load %arg7[%c0_2, %c0_3] : memref<64x256xbf16, #tpu.memory_space<vmem>>, vector<64x256xbf16>
    %cst = arith.constant dense<0.000000e+00> : vector<16x256xf32>
    %9 = tpu.matmul %7, %8, %cst {dimension_numbers = #tpu.dot_dimension_numbers<[1], [0], [0], [1], [0, 0, 1, 1], [], []>} : vector<16x64xbf16>, vector<64x256xbf16>, vector<16x256xf32> -> vector<16x256xf32>
    %c0_4 = arith.constant 0 : index
    %c0_5 = arith.constant 0 : index
    %10 = vector.load %arg8[%c0_4, %c0_5] : memref<1x256xf32, #tpu.memory_space<vmem>>, vector<1x256xf32>
    %11 = vector.broadcast %10 : vector<1x256xf32> to vector<16x256xf32>
    %12 = arith.addf %9, %11 : vector<16x256xf32>
    %13 = arith.truncf %12 : vector<16x256xf32> to vector<16x256xbf16>
    %c0_6 = arith.constant 0 : index
    %c0_7 = arith.constant 0 : index
    %14 = vector.load %arg9[%c0_6, %c0_7] : memref<16x256xbf16, #tpu.memory_space<vmem>>, vector<16x256xbf16>
    tpu.vector_store %arg9[%c0_6, %c0_7], %13 {strides = array<i32>} : memref<16x256xbf16, #tpu.memory_space<vmem>>, vector<16x256xbf16>,
    return
  }
  func.func @transform_0(%arg0: i32, %arg1: memref<11xi32, #tpu.memory_space<smem>>) -> (i32, i32) {
    %c0_i32 = arith.constant 0 : i32
    %c0_i32_0 = arith.constant 0 : i32
    %c0_i32_1 = arith.constant 0 : i32
    return %c0_i32, %c0_i32_0 : i32, i32
  }
  func.func @transform_1(%arg0: i32, %arg1: memref<11xi32, #tpu.memory_space<smem>>) -> (i32, i32) {
    %c0_i32 = arith.constant 0 : i32
    %c0_i32_0 = arith.constant 0 : i32
    %c0_i32_1 = arith.constant 0 : i32
    return %c0_i32, %c0_i32_0 : i32, i32
  }
  func.func @transform_2(%arg0: i32, %arg1: memref<11xi32, #tpu.memory_space<smem>>) -> (i32, i32) {
    %c0_i32 = arith.constant 0 : i32
    %c0_i32_0 = arith.constant 0 : i32
    %c0_i32_1 = arith.constant 0 : i32
    return %c0_i32, %c0_i32_0 : i32, i32
  }
  func.func @transform_3(%arg0: i32, %arg1: memref<11xi32, #tpu.memory_space<smem>>) -> (i32, i32, i32) {
    %c0_i32 = arith.constant 0 : i32
    %c0_i32_0 = arith.constant 0 : i32
    %c0_i32_1 = arith.constant 0 : i32
    %c0_i32_2 = arith.constant 0 : i32
    return %c0_i32, %c0_i32_0, %c0_i32_1 : i32, i32, i32
  }
  func.func @transform_4(%arg0: i32, %arg1: memref<11xi32, #tpu.memory_space<smem>>) -> (i32, i32, i32) {
    %c0_i32 = arith.constant 0 : i32
    %c0_i32_0 = arith.constant 0 : i32
    %c0_i32_1 = arith.constant 0 : i32
    %c0_i32_2 = arith.constant 0 : i32
    return %c0_i32, %c0_i32_0, %c0_i32_1 : i32, i32, i32
  }
  func.func @transform_5(%arg0: i32, %arg1: memref<11xi32, #tpu.memory_space<smem>>) -> (i32, i32) {
    %c0_i32 = arith.constant 0 : i32
    %c0_i32_0 = arith.constant 0 : i32
    return %c0_i32, %arg0 : i32, i32
  }
  func.func @transform_6(%arg0: i32, %arg1: memref<11xi32, #tpu.memory_space<smem>>) -> (i32, i32) {
    %c0_i32 = arith.constant 0 : i32
    %c0_i32_0 = arith.constant 0 : i32
    return %c0_i32, %arg0 : i32, i32
  }
  func.func @transform_7(%arg0: i32, %arg1: memref<11xi32, #tpu.memory_space<smem>>) -> (i32, i32) {
    %c0_i32 = arith.constant 0 : i32
    %c0_i32_0 = arith.constant 0 : i32
    return %c0_i32, %arg0 : i32, i32
  }
}

</mosaic_0001>

<bundles_post_ra>
// kernel: tpu_custom_call.1
= control target key start
LH: loop header
LB: loop body
LE: loop exit
PB: predicated region body
PF: predicated region fallthrough
CT: control target
= control target key end

     0   :  { %s2005_s0 = inlined_call_operand.hbm [shape: s32[11], index: 0, kind: input, shape index: {}]   ;;  %s2006_s1 = inlined_call_operand.hbm [shape: f32[16,32], index: 1, kind: input, shape index: {}]   ;;  %s2007_s2 = inlined_call_operand.hbm [shape: f32[32,192], index: 2, kind: input, shape index: {}]   ;;  %s2008_s3 = inlined_call_operand.hbm [shape: f32[1,192], index: 3, kind: input, shape index: {}]   ;;  %s2009_s4 = inlined_call_operand.hbm [shape: f32[3,64,64], index: 4, kind: input, shape index: {}]   ;;  %s2010_s5 = inlined_call_operand.vmem [shape: f32[3,1,64], index: 5, kind: input, shape index: {}]   ;;  %s2011_s6 = inlined_call_operand.hbm [shape: bf16[64,2816], index: 6, kind: input, shape index: {}]   ;;  %s2012_s7 = inlined_call_operand.vmem [shape: f32[1,2816], index: 7, kind: input, shape index: {}]   ;;  %s2013_s8 = inlined_call_operand.hbm [shape: bf16[16,2816], index: 8, kind: output, shape index: {}]  }
   0x1   :  { %2030 = sst [smem:[#allocation26_spill]] %s2006_s1  ;;  %s1369_s29 = scalar_lea.hbm %s2005_s0, 16 }
   0x2   :  { %2031 = sst [smem:[#allocation27_spill]] %s2013_s8  ;;  %p1370_p0 = scmp.ne.s32.totalorder %s2005_s0, %s1369_s29 }
   0x3   :  { %p1373_p1 = scmp.lt.u32.totalorder %s1369_s29, %s2005_s0 }
   0x5   :  { %p1375_p2 = pnand %p1373_p1, %p1370_p0 }
   0x7   :  { %1378 = shalt.err (!%p1375_p2)  }
   0x8   :  { %s1603_s12 = smov [#allocation4]  }
   0x9   :  { %14 = dma.hbm_to_smem %s2005_s0, 16, %s1603_s12, [#allocation3] }
   0xa   :  { %1565 = dma.done.wait [#allocation3], 16 }
   0xb   :  { %1566 = vsyncadd [#allocation3], 4294967280 }
   0xc   :  { %16 = sfence }
   0xd   :  { %17 = vsyncpa [#allocation6], 0 }
   0xe   :  { %18 = vsyncpa [#allocation9], 0 }
   0xf   :  { %19 = vsyncpa [#allocation12], 0 }
  0x10   :  { %20 = vsyncpa [#allocation7], 0 }
  0x11   :  { %22 = vsyncpa [#allocation7 + $0x1], 0  ;;  %s1678_s15 = smov 0   ;;  %s1680_s16 = smov 0  }
  0x12   :  { %s1682_s17 = smov 0   ;;  %s1684_s18 = smov 0  }
  0x13 LB: > { %2032 = sst [smem:[#allocation21_spill]] %s1589_s15  ;;  %s1699_s0 = sadd.s32 4294967295, %s1601_s18   ;;  %s1601_s18 = sphi %s1684_s18, %s2066_s18   ;;  %s1597_s17 = sphi %s1682_s17, %s2070_s17   ;;  %s1593_s16 = sphi %s1680_s16, %s2069_s16   ;;  %s1589_s15 = sphi %s1678_s15, %s2068_s15  }
  0x14   : > { %s1062_s19 = sadd.s32 4294967294, %s1601_s18   ;;  %s1703_s20 = sadd.s32 1, %s1601_s18  }
  0x15   : > { %2033 = sst [smem:[#allocation22_spill]] %s1703_s20  ;;  %s140_s21 = sadd.s32 1, %s1597_s17 }
  0x16   : > { %s137_s22 = ssub.s32 %s1601_s18, %s1703_s20  ;;  %p147_p3 = scmp.ne.s32.totalorder %s1597_s17, %s1593_s16 }
  0x17   : > { %p138_p4 = scmp.eq.s32.totalorder %s137_s22, 0  ;;  %p148_p5 = scmp.eq.s32.totalorder %s1601_s18, 0 }
  0x18   : > { %p153_p6 = scmp.ne.s32.totalorder %s1593_s16, %s1589_s15  ;;  %p2014_p7 = scmp.eq.s32.totalorder %s1699_s0, 0 }
  0x19   : > { %s1715_s23 = scalar_select %p138_p4, %s1597_s17, %s140_s21  }
  0x1a   : > { %p1717_p8 = por %p148_p5, %p147_p3  ;;  %p1723_p9 = por %p2014_p7, %p153_p6 }
  0x1b   : > { %2034 = sst [smem:[#allocation23_spill]] %s1715_s23  ;;  %p203_p10 = scmp.eq.s32.totalorder %s1699_s0, 10 }
  0x1c   : > { %s2035_s24 = scalar_select %p1717_p8, 1, 0 }
  0x1d   : > { %s2036_s25 = scalar_select %p1723_p9, 1, 0 }
  0x1e   : > { %p209_p11 = scmp.eq.s32.totalorder %s1062_s19, 10  ;;  %p1063_p12 = scmp.ge.s32.totalorder %s1601_s18, 1 }
  0x1f   : > { %p216_p13 = scmp.lt.s32.totalorder %s1601_s18, 12  ;;  %p1730_p0 = por %p203_p10, %p147_p3 }
  0x20   : > { %p1734_p1 = por %p209_p11, %p153_p6  ;;  %s1604_s29 = smov [#allocation5]  }
  0x21   : > { %s2037_s26 = scalar_select %p1730_p0, 1, 0 }
  0x22   : > { %s2039_s27 = scalar_select %p1734_p1, 1, 0 }
  0x23   : > { %2038 = sst [smem:[#allocation24_spill]] %s2037_s26  ;;  %p1738_p2 = pnand %p1063_p12, %p216_p13 }
  0x24   : > { %2040 = sst [smem:[#allocation25_spill]] %s2039_s27  ;;  %s228_s30 = sshll.u32 %s1604_s29, 4  ;;  %s229_s30 = int_to_ptr.vmem [resolvable:$true] %s228_s30 }
  0x25   : > { %s2041_s28 = scalar_select %p1738_p2, 1, 0 }
  0x26   : > { %p1278_p5 = pneg %p1738_p2  ;;  %s1605_s10 = smov [#allocation8]  }
  0x27   : > { %s241_s11 = sshll.u32 %s1605_s10, 4  ;;  %s2043_s1 = sld [smem:[#allocation26_spill]]  ;;  %s242_s11 = int_to_ptr.vmem [resolvable:$true] %s241_s11 }
  0x28   : > { %p1747_p3 = pnand %p1278_p5, %p2014_p7 }
  0x2a   : > { %p1760_p11 = pneg %p1747_p3 }
  0x2d   : > { %s1379_s14 = scalar_lea.hbm %s2043_s1, 256 }
  0x2e   : > { %p1380_p10 = scmp.ne.s32.totalorder %s2043_s1, %s1379_s14  ;;  %p1386_p5 = scmp.lt.u32.totalorder %s1379_s14, %s2043_s1 }
  0x30   : > { %p1382_p12 = pnand %p1760_p11, %p1380_p10 }
  0x32   : > { %p1383_p13 = pneg %p1382_p12 }
  0x34   : > { %p1388_p4 = pnand %p1386_p5, %p1383_p13 }
  0x36   : > { %1391 = shalt.err (!%p1388_p4)
}
  0x37   : > { %s1392_s10 = scalar_lea.vmem %s229_s30, 256  ;;  %p1400_p0 = scmp.lt.s32.totalorder %s229_s30, %s229_s30 }
  0x38   : > { %p1393_p7 = scmp.ne.s32.totalorder %s229_s30, %s1392_s10  ;;  %p1401_p9 = scmp.lt.s32.totalorder %s1392_s10, %s1392_s10 }
  0x3a   : > { %p1395_p6 = pnand %p1393_p7, %p1760_p11  ;;  %p1402_p2 = por %p1401_p9, %p1400_p0 }
  0x3c   : > { %p1396_p1 = pneg %p1395_p6 }
  0x3e   : > { %p1403_p8 = pnand %p1402_p2, %p1396_p1 }
  0x40   : > { %1406 = shalt.err (!%p1403_p8)
}
  0x41   : > { %s2022_s12 = smov 128   ;;  %s2024_s23 = smov 8  }
  0x42   : > { %1281 = dma.hbm_to_vmem [thread:$0]  (!%p1747_p3), %s2043_s1, 256, %s229_s30, [#allocation6], %s2022_s12, %s2022_s12, %s2024_s23  }
  0x43   : > { %p2045_p7 = scmp.ne.s32.totalorder %s2035_s24, 0  ;;  %p2046_p4 = scmp.lt.s32.totalorder %s1601_s18, 11 }
  0x44   : > { %s1407_s10 = scalar_lea.hbm %s2007_s2, 1024 }
  0x45   : > { %p1783_p6 = pnand %p2046_p4, %p2045_p7  ;;  %p1408_p8 = scmp.ne.s32.totalorder %s2007_s2, %s1407_s10 }
  0x46   : > { %p1414_p1 = scmp.lt.u32.totalorder %s1407_s10, %s2007_s2 }
  0x47   : > { %s2047_s19 = scalar_select %p1783_p6, 1, 0 }
  0x48   : > { %p1410_p9 = pnand %p1408_p8, %p1760_p11 }
  0x4a   : > { %p1411_p0 = pneg %p1410_p9 }
  0x4c   : > { %p1416_p2 = pnand %p1414_p1, %p1411_p0 }
  0x4e   : > { %1419 = shalt.err (!%p1416_p2)
}
  0x4f   : > { %s1420_s24 = scalar_lea.vmem %s242_s11, 1024  ;;  %p1428_p5 = scmp.lt.s32.totalorder %s242_s11, %s242_s11 }
  0x50   : > { %p1421_p10 = scmp.ne.s32.totalorder %s242_s11, %s1420_s24  ;;  %p1429_p7 = scmp.lt.s32.totalorder %s1420_s24, %s1420_s24 }
  0x52   : > { %p1423_p12 = pnand %p1421_p10, %p1760_p11  ;;  %p1430_p4 = por %p1429_p7, %p1428_p5 }
  0x54   : > { %p1424_p13 = pneg %p1423_p12 }
  0x56   : > { %p1431_p6 = pnand %p1430_p4, %p1424_p13 }
  0x58   : > { %1434 = shalt.err (!%p1431_p6)
}
  0x59   : > { %s1608_s20 = smov 256   ;;  %s1609_s27 = smov 16  }
  0x5a   : > { %1284 = dma.hbm_to_vmem [thread:$0]  (!%p1747_p3), %s2007_s2, 1024, %s242_s11, [#allocation9], %s1608_s20, %s1608_s20, %s1609_s27  }
  0x5b   : > { %s1610_s29 = smov [#allocation10]   ;;  %s1611_s13 = smov [#allocation11]  }
  0x5c   : > { %s255_s10 = sshll.u32 %s1610_s29, 4  ;;  %s265_s30 = sshll.u32 %s1611_s13, 4  ;;  %s256_s10 = int_to_ptr.vmem [resolvable:$true] %s255_s10  ;;  %s266_s30 = int_to_ptr.vmem [resolvable:$true] %s265_s30 }
  0x5d   : > { %s1435_s24 = scalar_lea.hbm %s2008_s3, 32 }
  0x5e   : > { %p1436_p6 = scmp.ne.s32.totalorder %s2008_s3, %s1435_s24  ;;  %p1442_p0 = scmp.lt.u32.totalorder %s1435_s24, %s2008_s3 }
  0x60   : > { %p1438_p8 = pnand %p1436_p6, %p1760_p11 }
  0x62   : > { %p1439_p9 = pneg %p1438_p8 }
  0x64   : > { %p1444_p1 = pnand %p1442_p0, %p1439_p9 }
  0x66   : > { %1447 = shalt.err (!%p1444_p1)
}
  0x67   : > { %s1448_s11 = scalar_lea.vmem %s256_s10, 32  ;;  %p1456_p13 = scmp.lt.s32.totalorder %s256_s10, %s256_s10 }
  0x68   : > { %p1449_p2 = scmp.ne.s32.totalorder %s256_s10, %s1448_s11  ;;  %p1457_p5 = scmp.lt.s32.totalorder %s1448_s11, %s1448_s11 }
  0x6a   : > { %p1451_p10 = pnand %p1449_p2, %p1760_p11  ;;  %p1458_p7 = por %p1457_p5, %p1456_p13 }
  0x6c   : > { %p1452_p12 = pneg %p1451_p10 }
  0x6e   : > { %p1459_p4 = pnand %p1458_p7, %p1452_p12 }
  0x70   : > { %1462 = shalt.err (!%p1459_p4)
}
  0x71   : > { %1287 = dma.hbm_to_vmem [thread:$0]  (!%p1747_p3), %s2008_s3, 32, %s256_s10, [#allocation9]  }
  0x72   : > { %s282_s8 = sand.u32 1, %s1601_s18   ;;  %s1463_s23 = scalar_lea.hbm %s2009_s4, 3072 }
  0x73   : > { %p1464_p6 = scmp.ne.s32.totalorder %s2009_s4, %s1463_s23  ;;  %p1470_p0 = scmp.lt.u32.totalorder %s1463_s23, %s2009_s4 }
  0x75   : > { %p1466_p8 = pnand %p1464_p6, %p1760_p11 }
  0x77   : > { %p1467_p9 = pneg %p1466_p8 }
  0x79   : > { %p1472_p1 = pnand %p1470_p0, %p1467_p9 }
  0x7b   : > { %1475 = shalt.err (!%p1472_p1)
}
  0x7c   : > { %s1476_s29 = scalar_lea.vmem %s266_s30, 3072  ;;  %p1484_p13 = scmp.lt.s32.totalorder %s266_s30, %s266_s30 }
  0x7d   : > { %p1477_p2 = scmp.ne.s32.totalorder %s266_s30, %s1476_s29  ;;  %p1485_p5 = scmp.lt.s32.totalorder %s1476_s29, %s1476_s29 }
  0x7f   : > { %p1479_p10 = pnand %p1477_p2, %p1760_p11  ;;  %p1486_p7 = por %p1485_p5, %p1484_p13 }
  0x81   : > { %p1480_p12 = pneg %p1479_p10 }
  0x83   : > { %p1487_p4 = pnand %p1486_p7, %p1480_p12 }
  0x85   : > { %1490 = shalt.err (!%p1487_p4)
}
  0x86   : > { %s2048_s10 = smov 8   ;;  %s2049_s13 = smov 128  }
  0x87   : > { %1290 = dma.hbm_to_vmem [thread:$0]  (!%p1747_p3), %s2009_s4, 3072, %s266_s30, [#allocation12], %s2049_s13, %s2049_s13, %s2048_s10  }
  0x88   : > { %s284_s22 = sand.u32 1, %s1597_s17   ;;  %s1111_s15 = sshll.u32 %s1601_s18, 7 }
  0x89   : > { %s1069_s1 = sshll.u32 %s284_s22, 6  ;;  %s1850_s23 = scalar_lea.hbm %s2011_s6, %s1111_s15 }
  0x8a   : > { %s286_s9 = scalar_lea.vmem [#allocation13], %s1069_s1  ;;  %s1854_s27 = scalar_lea.sflag [#allocation6], %s282_s8 }
  0x8b   : > { %s293_s20 = sshll.u32 %s286_s9, 4  ;;  %s1491_s14 = scalar_lea.hbm %s1850_s23, 1024  ;;  %s1852_s20 = int_to_ptr.vmem [resolvable:$true] %s293_s20 }
  0x8c   : > { %p1492_p3 = scmp.ne.s32.totalorder %s1850_s23, %s1491_s14  ;;  %p2050_p11 = scmp.ne.s32.totalorder %s2047_s19, 0 }
  0x8d   : > { %s1496_s29 = scalar_lea.hbm %s2011_s6, 11264  ;;  %p1497_p0 = scmp.lt.u32.totalorder %s1850_s23, %s2011_s6 }
  0x8e   : > { %p1493_p6 = pneg %p2050_p11  ;;  %p1498_p1 = scmp.lt.u32.totalorder %s1496_s29, %s1491_s14 }
  0x8f   : > { %p1500_p10 = scmp.lt.u32.totalorder %s1491_s14, %s1850_s23 }
  0x90   : > { %p1494_p8 = pnand %p1493_p6, %p1492_p3  ;;  %p1499_p2 = por %p1498_p1, %p1497_p0 }
  0x92   : > { %p1495_p9 = pneg %p1494_p8  ;;  %p1501_p12 = por %p1500_p10, %p1499_p2 }
  0x94   : > { %p1502_p13 = pnand %p1501_p12, %p1495_p9 }
  0x96   : > { %1505 = shalt.err (!%p1502_p13)
}
  0x97   : > { %s1506_s8 = scalar_lea.vmem %s1852_s20, 1024  ;;  %s1612_s22 = smov [#allocation13]  }
  0x98   : > { %p1507_p5 = scmp.ne.s32.totalorder %s1852_s20, %s1506_s8  ;;  %s1511_s1 = sshll.u32 %s1612_s22, 4  ;;  %s1512_s1 = int_to_ptr.vmem [resolvable:$false] %s1511_s1 }
  0x99   : > { %s1513_s15 = scalar_lea.vmem %s1512_s1, 2048  ;;  %p1514_p3 = scmp.lt.s32.totalorder %s1852_s20, %s1512_s1 }
  0x9a   : > { %p1509_p7 = pnand %p1507_p5, %p1493_p6  ;;  %p1515_p8 = scmp.lt.s32.totalorder %s1513_s15, %s1506_s8 }
  0x9c   : > { %p1510_p4 = pneg %p1509_p7  ;;  %p1516_p0 = por %p1515_p8, %p1514_p3 }
  0x9e   : > { %p1517_p1 = pnand %p1516_p0, %p1510_p4 }
  0xa0   : > { %1520 = shalt.err (!%p1517_p1)
}
  0xa1   : > { %s1613_s26 = smov 1408   ;;  %p2051_p6 = scmp.ne.s32.totalorder %s2041_s28, 0 }
  0xa2   : > { %1294 = dma.hbm_to_vmem [thread:$0]  (!%p2050_p11), %s1850_s23, 1024, %s1852_s20, %s1854_s27, %s1613_s26, %s2049_s13, %s2048_s10  }
  0xa3   : > { %313 = sbr.rel (%p2051_p6) target bundleno = 1004 (0x3ec), region = 48  ;;  %p2052_p9 = scmp.eq.s32.totalorder (!%p2051_p6), %s1699_s0, 0 }
  0xaa   : > { %1568 = dma.done.wait (%p2052_p9), [#allocation6], 256   ;;  %p2053_p2 = pmov %p2052_p9 }
  0xac   : > { %1570 = vsyncadd (%p2053_p2), [#allocation6], 4294967040  ;;  %p2054_p10 = pmov %p2053_p2 }
  0xad   : > { %p2055_p12 = pmov %p2053_p2 }
  0xae   : > { %1572 = dma.done.wait (%p2054_p10), [#allocation9], 1056  }
  0xaf   : > { %1574 = vsyncadd (%p2055_p12), [#allocation9], 4294966240  ;;  %p2056_p13 = pmov %p2053_p2 }
  0xb0   : > { %p2057_p11 = pmov %p2053_p2 }
  0xb1   : > { %1576 = dma.done.wait (%p2056_p13), [#allocation12], 3072  }
  0xb2   : > { %1578 = vsyncadd (%p2057_p11), [#allocation12], 4294964224  ;;  %s331_s28 = sand.u32 1, %s1699_s0   ;;  %s1900_s19 = sand.u32 1, %s1593_s16  }
  0xb3   : > { %s1077_s10 = sshll.u32 %s1900_s19, 6  ;;  %s332_s13 = scalar_lea.sflag [#allocation6], %s331_s28 }
  0xb4   : > { %s1903_s12 = scalar_lea.vmem [#allocation13], %s1077_s10  ;;  %p2058_p5 = scmp.ne.s32.totalorder %s2036_s25, 0 }
  0xb6   : > { %1580 = dma.done.wait (%p2058_p5), %s332_s13, 1024  }
  0xb7   : > { %1582 = vsyncadd (%p2058_p5), %s332_s13, 4294966272  ;;  %s1078_s23 = sshll.u32 %s1900_s19, 4  ;;  %s1079_s9 = sshll.u32 %s1699_s0, 1 }
  0xb8   : > { %p372_p7 = scmp.lt.s32.totalorder %s1079_s9, 21  ;;  %s1917_s30 = scalar_lea.vmem [#allocation14], %s1078_s23 }
  0xb9   : > { %p2059_p4 = scmp.ne.s32.totalorder %s1699_s0, 0 }
  0xba   : > { %s2072_s9 = smov (!%p372_p7, %s1079_s9), 21  ;;  %v385_v0 = vld [vmem:[#allocation8 + $0x8] sm:$0xff] (!%p2059_p4)  ;;  %v387_v1 = vld [vmem:[#allocation8 + $0x18] sm:$0xff] (!%p2059_p4)  ;;  %v384_v2 = vld [vmem:[#allocation8] sm:$0xff] (!%p2059_p4)  ;;  %v1614_v7 = vmov (!%p2059_p4), 0.0   ;;  %vm404_vm0 = vcmask (!%p2059_p4), 261120   ;;  %v394_v39 = vlaneseq (!%p2059_p4) }
  0xbb   : > { %s374_s14 = scalar_lea.vmem %s2012_s7, %s2072_s9  ;;  %381 = sbr.rel (%p2059_p4) target bundleno = 752 (0x2f0), region = 72  ;;  %v1202_v3 = vpack.c.bf16 (!%p2059_p4), %v387_v1, %v385_v0  ;;  %v386_v4 = vld [vmem:[#allocation8 + $0x10] sm:$0xff] (!%p2059_p4)  ;;  %v389_v5 = vld [vmem:[#allocation8 + $0x28] sm:$0xff] (!%p2059_p4)  ;;  %v391_v6 = vld [vmem:[#allocation8 + $0x38] sm:$0xff] (!%p2059_p4)  ;;  %475 = vmatprep.mubr.f32.mxu0 (!%p2059_p4), %v1614_v7  ;;  %vm507_vm1 = vcmask (!%p2059_p4), 523264  }
  0xbc   : > { %v1204_v8 = vpack.c.bf16 (!%p2059_p4), %v386_v4, %v384_v2  ;;  %v1206_v9 = vpack.c.bf16 (!%p2059_p4), %v391_v6, %v389_v5  ;;  %v388_v10 = vld [vmem:[#allocation8 + $0x20] sm:$0xff] (!%p2059_p4)  ;;  %v390_v11 = vld [vmem:[#allocation8 + $0x30] sm:$0xff] (!%p2059_p4)  ;;  %v383_v20 = vld [vmem:[#allocation5 + $0x8] sm:$0xff] (!%p2059_p4)  ;;  %v395_v40 = vshrl.u32 (!%p2059_p4), %v394_v39, 7  ;;  %s1615_s25 = smov (!%p2059_p4), 64  }
  0xbd   : > { %1203 = vmatprep.subr.bf16.mxu0 (!%p2059_p4), %v1202_v3  ;;  %v492_v12 = vld [vmem:[#allocation11] sm:$0xff] (!%p2059_p4)  ;;  %v493_v13 = vld [vmem:[#allocation11 + $0x8] sm:$0xff] (!%p2059_p4)  ;;  %v1208_v14 = vpack.c.bf16 (!%p2059_p4), %v390_v11, %v388_v10  ;;  %v494_v16 = vld [vmem:[#allocation11 + $0x10] sm:$0xff] (!%p2059_p4) }
  0xbe   : > { %1205 = vmatpush1.bf16.msra.mxu0 (!%p2059_p4), %v1204_v8  ;;  %v1210_v15 = vpack.c.bf16 (!%p2059_p4), %v493_v13, %v492_v12  ;;  %v495_v17 = vld [vmem:[#allocation11 + $0x18] sm:$0xff] (!%p2059_p4)  ;;  %v382_v19 = vld [vmem:[#allocation5] sm:$0xff] (!%p2059_p4)  ;;  %v496_v21 = vld [vmem:[#allocation11 + $0x20] sm:$0xff] (!%p2059_p4)  ;;  %v396_v44 = vsub.s32 (!%p2059_p4), 0, %v395_v40  ;;  %v400_v46 = vsub.s32 (!%p2059_p4), 1, %v395_v40 }
  0xbf   : > { %1207 = vmatprep.subr.bf16.mxu0 (!%p2059_p4), %v1206_v9  ;;  %v1214_v18 = vpack.c.bf16 (!%p2059_p4), %v495_v17, %v494_v16  ;;  %v497_v22 = vld [vmem:[#allocation11 + $0x28] sm:$0xff] (!%p2059_p4)  ;;  %v498_v24 = vld [vmem:[#allocation11 + $0x30] sm:$0xff] (!%p2059_p4)  ;;  %v499_v25 = vld [vmem:[#allocation11 + $0x38] sm:$0xff] (!%p2059_p4) }
  0xc0   : > { %1211 = vmatprep.subr.bf16.mxu1 (!%p2059_p4), %v1210_v15  ;;  %v1218_v23 = vpack.c.bf16 (!%p2059_p4), %v497_v22, %v496_v21  ;;  %v1222_v26 = vpack.c.bf16 (!%p2059_p4), %v499_v25, %v498_v24  ;;  %v699_v27 = vld [vmem:[#allocation11 + $0x80] sm:$0xff] (!%p2059_p4)  ;;  %v700_v28 = vld [vmem:[#allocation11 + $0x88] sm:$0xff] (!%p2059_p4)  ;;  %v596_v32 = vld [vmem:[#allocation11 + $0x50] sm:$0xff] (!%p2059_p4) }
  0xc1   : > { %1213 = vmatpush3.bf16.msra.mxu1 (!%p2059_p4), %v1210_v15  ;;  %v1242_v29 = vpack.c.bf16 (!%p2059_p4), %v700_v28, %v699_v27  ;;  %v594_v30 = vld [vmem:[#allocation11 + $0x40] sm:$0xff] (!%p2059_p4)  ;;  %v595_v31 = vld [vmem:[#allocation11 + $0x48] sm:$0xff] (!%p2059_p4)  ;;  %v597_v34 = vld [vmem:[#allocation11 + $0x58] sm:$0xff] (!%p2059_p4) }
  0xc2   : > { %1209 = vmatpush1.bf16.msra.mxu0 %v1208_v14  ;;  %1215 = vmatprep.subr.bf16.mxu1 %v1214_v18  ;;  %v1226_v33 = vpack.c.bf16 %v595_v31, %v594_v30  ;;  %v1230_v35 = vpack.c.bf16 %v597_v34, %v596_v32  ;;  %v598_v36 = vld [vmem:[#allocation11 + $0x60] sm:$0xff]  ;;  %v599_v37 = vld [vmem:[#allocation11 + $0x68] sm:$0xff]  ;;  %v600_v41 = vld [vmem:[#allocation11 + $0x70] sm:$0xff] }
  0xc3   : > { %v1234_v38 = vpack.c.bf16 %v599_v37, %v598_v36  ;;  %v601_v42 = vld [vmem:[#allocation11 + $0x78] sm:$0xff]  ;;  %v701_v55 = vld [vmem:[#allocation11 + $0x90] sm:$0xff]  ;;  %v703_v62 = vld [vmem:[#allocation11 + $0xa0] sm:$0xff] }
  0xc4   : > { %1227 = vmatprep.subr.bf16.mxu0 %v1226_v33  ;;  %v1238_v43 = vpack.c.bf16 %v601_v42, %v600_v41  ;;  %v392_v45 = vld [vmem:[#allocation10] sm:$0x3]  ;;  %v704_v63 = vld [vmem:[#allocation11 + $0xa8] sm:$0xff]  ;;  %v705_v1 = vld [vmem:[#allocation11 + $0xb0] sm:$0xff] }
  0xc5   : > { %1081 = vmatmul.mubr.msk.f32.vlgmr.msra.gmra.mrb[0].mxu0 %vm404_vm0, %v382_v19  ;;  %1217 = vmatpush3.bf16.msra.mxu1 %v1214_v18  ;;  %v397_v47 = vrot.slane %v392_v45, %v396_v44  ;;  %v401_v49 = vrot.slane %v392_v45, %v400_v46  ;;  %v702_v56 = vld [vmem:[#allocation11 + $0x98] sm:$0xff]  ;;  %v1250_v0 = vpack.c.bf16 %v704_v63, %v703_v62  ;;  %v1083_v8 = vld [vmem:[%s2010_s5] ss:$0 sm:$0xff]  ;;  %v1087_v24 = vld [vmem:[%s2010_s5 + $0x1] ss:$0 sm:$0xff] }
  0xc6   : > { %481 = vmatprep.mubr.f32.mxu0 %v1614_v7  ;;  %1219 = vmatprep.subr.bf16.mxu1 %v1218_v23  ;;  %v1246_v60 = vpack.c.bf16 %v702_v56, %v701_v55  ;;  %v706_v2 = vld [vmem:[#allocation11 + $0xb8] sm:$0xff] }
  0xc7   : > { %1229 = vmatpush3.bf16.msra.mxu0 %v1226_v33  ;;  %v1254_v3 = vpack.c.bf16 %v706_v2, %v705_v1  ;;  %v1091_v16 = vld [vmem:[%s2010_s5 + $0x2] ss:$0 sm:$0xff] }
  0xc8   : > { %1231 = vmatprep.subr.bf16.mxu0 %v1230_v35 }
  0xc9   : > { %1082 = vmatmul.mubr.msk.f32.gmra.mrb[2].mxu0 %vm404_vm0, %v383_v20  ;;  %1221 = vmatpush3.bf16.msra.mxu1 %v1218_v23 }
  0xca   : > { %1223 = vmatprep.subr.bf16.mxu1 %v1222_v26 }
  0xcb   : > { %1233 = vmatpush3.bf16.msra.mxu0 %v1230_v35 }
  0xcc   : > { %1235 = vmatprep.subr.bf16.mxu0 %v1234_v38 }
  0xcd   : > { %1225 = vmatpush3.bf16.msra.mxu1 %v1222_v26 }
  0xce   : > { %1243 = vmatprep.subr.bf16.mxu1 %v1242_v29 }
  0xcf   : > { %1237 = vmatpush3.bf16.msra.mxu0 %v1234_v38 }
  0xd0   : > { %1239 = vmatprep.subr.bf16.mxu0 %v1238_v43 }
  0xd3   : > { %1241 = vmatpush3.bf16.msra.mxu0 %v1238_v43 }
 0x198   : > { %v477_v48 = vpop.f32.mrb[0].mxu0 }
 0x199   : > { %v478_v50 = vadd.f32 %v477_v48, %v397_v47  ;;  %v479_v51 = vpop.f32.mrb[1].mxu0 }
 0x19a   : > { %v480_v53 = vadd.f32 %v479_v51, %v401_v49 }
 0x19b   : > { %v488_v52 = vmax.f32 %v478_v50, 0.0 }
 0x19c   : > { %v483_v54 = vpop.f32.mrb[2].mxu0  ;;  %v489_v61 = vmax.f32 %v480_v53, 0.0 }
 0x19d   : > { %v484_v57 = vadd.f32 %v483_v54, %v397_v47  ;;  %v485_v58 = vpop.f32.mrb[3].mxu0  ;;  %610 = vrot.lane.b32.xlu0 %v488_v52, %s1615_s25  ;;  %1161 = vmatprep.mubr.msk.f32.mxu1 %vm507_vm1, %v488_v52 }
 0x19e   : > { %v486_v4 = vadd.f32 %v485_v58, %v401_v49 }
 0x19f   : > { %v490_v59 = vmax.f32 %v484_v57, 0.0 }
 0x1a0   : > { %v491_v5 = vmax.f32 %v486_v4, 0.0 }
 0x1a1   : > { %612 = vrot.lane.b32.xlu0 %v490_v59, %s1615_s25  ;;  %1162 = vmatmul.mubr.msk.f32.vlgmr.msra.gmra.mrb[0].mxu1 %vm507_vm1, %v490_v59 }
 0x1a2   : > { %1245 = vmatpush3.bf16.msra.mxu1 %v1242_v29  ;;  %1199 = vmatprep.mubr.msk.f32.mxu1 %vm507_vm1, %v489_v61 }
 0x1a3   : > { %1247 = vmatprep.subr.bf16.mxu1 %v1246_v60 }
 0x1a6   : > { %1249 = vmatpush3.bf16.msra.mxu1 %v1246_v60 }
 0x1a7   : > { %1251 = vmatprep.subr.bf16.mxu1 %v1250_v0 }
 0x1aa   : > { %1253 = vmatpush3.bf16.msra.mxu1 %v1250_v0 }
 0x1ab   : > { %1255 = vmatprep.subr.bf16.mxu1 %v1254_v3 }
 0x1ae   : > { %1257 = vmatpush3.bf16.msra.mxu1 %v1254_v3 }
 0x1b1   : > { %1200 = vmatmul.mubr.msk.f32.vlgmr.msra.gmra.mrb[2].mxu1 %vm507_vm1, %v491_v5 }
 0x20f   : > { %v611_v6 = vpop.permute.xlu0 %610 }
 0x210   : > { %1180 = vmatprep.mubr.msk.f32.mxu0 %vm507_vm1, %v611_v6 }
 0x213   : > { %v613_v7 = vpop.permute.xlu0 %612 }
 0x214   : > { %1181 = vmatmul.mubr.msk.f32.vlgmr.msra.gmra.mrb[4].mxu0 %vm507_vm1, %v613_v7 }
 0x274   : > { %v1163_v9 = vpop.f32.mrb[0].mxu1 }
 0x275   : > { %v586_v10 = vadd.f32 %v1163_v9, %v1083_v8  ;;  %v580_v11 = vpop.f32.mrb[1].mxu1 }
 0x276   : > { %v581_v12 = vadd.f32 %v1083_v8, %v580_v11 }
 0x277   : > { %v590_v13 = vmax.f32 %v586_v10, 0.0 }
 0x278   : > { %v589_v14 = vmax.f32 %v581_v12, 0.0 }
 0x27a   : > { %v591_v15 = vpack.c.bf16 %v590_v13, %v589_v14 }
 0x27c   : > { %592 = vst.msk [vmem:[#allocation2] sm:$0xff] %vm507_vm1, %v591_v15 }
 0x284   : > { %v1201_v17 = vpop.f32.mrb[2].mxu1 }
 0x285   : > { %v793_v18 = vadd.f32 %v1201_v17, %v1091_v16  ;;  %v787_v19 = vpop.f32.mrb[3].mxu1 }
 0x286   : > { %v788_v20 = vadd.f32 %v1091_v16, %v787_v19 }
 0x287   : > { %v797_v21 = vmax.f32 %v793_v18, 0.0 }
 0x288   : > { %v796_v22 = vmax.f32 %v788_v20, 0.0 }
 0x28a   : > { %v798_v23 = vpack.c.bf16 %v797_v21, %v796_v22 }
 0x28c   : > { %800 = vst.msk [vmem:[#allocation2 + $0x10] sm:$0xff] %vm507_vm1, %v798_v23 }
 0x2e7   : > { %v1182_v25 = vpop.f32.mrb[4].mxu0 }
 0x2e8   : > { %v690_v26 = vadd.f32 %v1182_v25, %v1087_v24  ;;  %v684_v27 = vpop.f32.mrb[5].mxu0 }
 0x2e9   : > { %v685_v28 = vadd.f32 %v1087_v24, %v684_v27 }
 0x2ea   : > { %v694_v29 = vmax.f32 %v690_v26, 0.0 }
 0x2eb   : > { %v693_v30 = vmax.f32 %v685_v28, 0.0 }
 0x2ed   : > { %v695_v31 = vpack.c.bf16 %v694_v29, %v693_v30 }
 0x2ef   : > { %697 = vst.msk [vmem:[#allocation2 + $0x8] sm:$0xff] %vm507_vm1, %v695_v31 }
 0x2f0 PF: > { %v1357_v32 = vld [vmem:[%s1903_s12 + $0x4] ss:$8 sps:$4 sm:$0xff]   ;;  %v1359_v33 = vld [vmem:[%s1903_s12] ss:$8 sps:$4 sm:$0xff]   ;;  %v1616_v34 = vmov 0   ;;  %s801_s1 = sld [smem:[#allocation4 + %s1699_s0]]  ;;  %v815_v42 = vlaneseq }
 0x2f1   : > { %901 = vmatprep.mubr.bf16.mxu0 %v1616_v34  ;;  %869 = vmatprep.subr.bf16.mxu0 %v1357_v32  ;;  %v1360_v35 = vld [vmem:[%s1903_s12 + $0x14] ss:$8 sps:$4 sm:$0xff]   ;;  %v1362_v36 = vld [vmem:[%s1903_s12 + $0x10] ss:$8 sps:$4 sm:$0xff]   ;;  %v1363_v37 = vld [vmem:[%s1903_s12 + $0x24] ss:$8 sps:$4 sm:$0xff]  }
 0x2f2   : > { %870 = vmatpush1.bf16.msra.mxu0 %v1359_v33  ;;  %v1365_v38 = vld [vmem:[%s1903_s12 + $0x20] ss:$8 sps:$4 sm:$0xff]   ;;  %v1366_v39 = vld [vmem:[%s1903_s12 + $0x34] ss:$8 sps:$4 sm:$0xff]   ;;  %v1368_v40 = vld [vmem:[%s1903_s12 + $0x30] ss:$8 sps:$4 sm:$0xff]  }
 0x2f3   : > { %871 = vmatprep.subr.bf16.mxu0 %v1360_v35  ;;  %vm865_vm2 = vcmask 523264   ;;  %v816_v43 = vshrl.u32 %v815_v42, 7  ;;  %v813_v45 = vld [vmem:[%s374_s14] sm:$0x3]  ;;  %s1114_s13 = sshll.u32 %s1699_s0, 7  ;;  %s2060_s12 = sld [smem:[#allocation24_spill]] }
 0x2f4   : > { %s940_s23 = sshll.u32 %s1917_s30, 4  ;;  %s2061_s27 = sld [smem:[#allocation27_spill]]  ;;  %s1960_s23 = int_to_ptr.vmem [resolvable:$true] %s940_s23 }
 0x2f5   : > { %v817_v44 = vsub.s32 0, %v816_v43  ;;  %v821_v46 = vsub.s32 1, %v816_v43  ;;  %s927_s0 = scalar_lea.sflag [#allocation7], %s1900_s19  ;;  %s1521_s25 = scalar_lea.vmem %s1960_s23, 256 }
 0x2f6   : > { %872 = vmatpush1.bf16.msra.mxu0 %v1362_v36  ;;  %s1094_s15 = sshll.u32 %s801_s1, 3  ;;  %p1522_p3 = scmp.ne.s32.totalorder %s1960_s23, %s1521_s25 }
 0x2f7   : > { %873 = vmatprep.subr.bf16.mxu0 %v1363_v37  ;;  %s803_s26 = scalar_lea.vmem [#allocation2], %s1094_s15  ;;  %v818_v47 = vrot.slane %v813_v45, %v817_v44  ;;  %v822_v48 = vrot.slane %v813_v45, %v821_v46  ;;  %s1617_s21 = smov [#allocation14]  }
 0x2f8   : > { %v804_v41 = vld [vmem:[%s803_s26] sm:$0xff]  ;;  %s1525_s29 = sshll.u32 %s1617_s21, 4  ;;  %s1526_s29 = int_to_ptr.vmem [resolvable:$false] %s1525_s29 }
 0x2f9   : > { %p2062_p8 = scmp.ne.s32.totalorder %s2060_s12, 0  ;;  %s1527_s24 = scalar_lea.vmem %s1526_s29, 512 }
 0x2fa   : > { %874 = vmatpush1.bf16.msra.mxu0 %v1365_v38  ;;  %s1958_s14 = scalar_lea.hbm %s2061_s27, %s1114_s13  ;;  %p1528_p6 = scmp.lt.s32.totalorder %s1960_s23, %s1526_s29 }
 0x2fb   : > { %875 = vmatprep.subr.bf16.mxu0 %v1366_v39  ;;  %p1523_p0 = pnand %p1522_p3, %p2062_p8  ;;  %p1529_p9 = scmp.lt.s32.totalorder %s1527_s24, %s1521_s25 }
 0x2fd   : > { %p1524_p1 = pneg %p1523_p0  ;;  %p1530_p2 = por %p1529_p9, %p1528_p6 }
 0x2fe   : > { %876 = vmatpush1.bf16.msra.mxu0 %v1368_v40 }
 0x2ff   : > { %p1531_p10 = pnand %p1530_p2, %p1524_p1 }
 0x301   : > { %1103 = vmatmul.mubr.msk.bf16.vlgmr.msra.gmra.mrb[0].mxu0 %vm865_vm2, %v804_v41 }
 0x3d4   : > { %v903_v49 = vpop.f32.mrb[0].mxu0 }
 0x3d5   : > { %v904_v50 = vadd.f32 %v903_v49, %v818_v47  ;;  %v905_v51 = vpop.f32.mrb[1].mxu0 }
 0x3d6   : > { %v906_v52 = vadd.f32 %v905_v51, %v822_v48  ;;  %v907_v53 = vpop.f32.mrb[2].mxu0 }
 0x3d7   : > { %v908_v54 = vadd.f32 %v907_v53, %v818_v47  ;;  %v909_v55 = vpop.f32.mrb[3].mxu0 }
 0x3d8   : > { %v1112_v56 = vpack.c.bf16 %v906_v52, %v904_v50  ;;  %v910_v57 = vadd.f32 %v909_v55, %v822_v48 }
 0x3da   : > { %924 = vst [vmem:[%s1917_s30] sm:$0xff] %v1112_v56  ;;  %v1113_v58 = vpack.c.bf16 %v910_v57, %v908_v54 }
 0x3dc   : > { %925 = vst [vmem:[%s1917_s30 + $0x8] sm:$0xff] %v1113_v58 }
 0x3dd   : > { %1534 = shalt.err (!%p1531_p10)
}
 0x3de   : > { %s1535_s30 = scalar_lea.hbm %s1958_s14, 256  ;;  %s1539_s22 = scalar_lea.hbm %s2061_s27, 2816 }
 0x3df   : > { %p1536_p12 = scmp.ne.s32.totalorder %s1958_s14, %s1535_s30  ;;  %p1540_p5 = scmp.lt.u32.totalorder %s1958_s14, %s2061_s27 }
 0x3e0   : > { %p1541_p7 = scmp.lt.u32.totalorder %s1539_s22, %s1535_s30  ;;  %p1543_p3 = scmp.lt.u32.totalorder %s1535_s30, %s1958_s14 }
 0x3e1   : > { %p1537_p13 = pnand %p1536_p12, %p2062_p8 }
 0x3e2   : > { %p1542_p4 = por %p1541_p7, %p1540_p5 }
 0x3e3   : > { %p1538_p11 = pneg %p1537_p13 }
 0x3e4   : > { %p1544_p0 = por %p1543_p3, %p1542_p4 }
 0x3e6   : > { %p1545_p1 = pnand %p1544_p0, %p1538_p11 }
 0x3e8   : > { %1548 = shalt.err (!%p1545_p1)
}
 0x3e9   : > { %s1618_s26 = smov 128   ;;  %s1619_s28 = smov 1408  }
 0x3ea   : > { %s1620_s10 = smov 8  }
 0x3eb   : > { %1276 = dma.vmem_to_hbm [thread:$0]  (%p2062_p8), %s1960_s23, 256, %s1958_s14, %s927_s0, %s1618_s26, %s1619_s28, %s1620_s10  }
 0x3ec PF: > { %s2063_s13 = sld [smem:[#allocation21_spill]]  ;;  %s2064_s9 = sld [smem:[#allocation25_spill]] }
 0x3ed   : > { %p1308_p6 = scmp.ge.s32.totalorder %s1601_s18, 2 }
 0x3f2   : > { %s955_s20 = sand.u32 1, %s2063_s13   ;;  %p2065_p9 = scmp.ne.s32.totalorder %s2064_s9, 0 }
 0x3f3   : > { %s956_s25 = scalar_lea.sflag [#allocation7], %s955_s20 }
 0x3f4   : > { %p1296_p2 = pnand %p1308_p6, %p2065_p9 }
 0x3f6   : > { %1584 = dma.done.wait (!%p1296_p2), %s956_s25, 256  }
 0x3f7   : > { %1586 = vsyncadd (!%p1296_p2), %s956_s25, 4294967040  ;;  %s2066_s18 = sld [smem:[#allocation22_spill]]  ;;  %s2067_s21 = sld [smem:[#allocation23_spill]] }
 0x3f8   : > { %s2068_s15 = smov %s1593_s16  ;;  %s2069_s16 = smov %s1597_s17 }
 0x3fd   : > { %p25_p10 = scmp.ge.s32.totalorder %s2066_s18, 13   ;;  %s2070_s17 = smov %s2067_s21 }
 0x3ff   :  { %27 = sbr.rel (!%p25_p10) target bundleno = 19 (0x13), region = 122 }
 0x406   :  { %961 = vsyncpa [#allocation6], 1 }
 0x407   :  { %963 = vsyncpa [#allocation6 + $0x1], 1 }
 0x408   :  { %964 = vsyncpa [#allocation9], 1 }
 0x409   :  { %965 = vsyncpa [#allocation12], 1 }
 0x40a   :  { %966 = vsyncpa [#allocation7], 1 }
 0x40b   :  { %968 = vsyncpa [#allocation7 + $0x1], 1 }

</bundles_post_ra>
